<compile_context>
chip_gen: v7x
topology: tpu7x:2x2x1
jax: 0.10.0
libtpu: 0.0.40
codegen_flags: <defaults>
</compile_context>

<pallas_src>
import math

import jax
import jax.numpy as jnp
from jax import lax
from jax.experimental import pallas as pl
from jax.experimental.pallas import tpu as pltpu

jax.config.update("jax_default_matmul_precision", "highest")


# ---------------------------------------------------------------------------
# Kernel 1: encoder projection   eh = enc_flat @ We^T + be
# ---------------------------------------------------------------------------
def _encoder_proj_kernel(enc_ref, we_ref, be_ref, eh_ref):
    eh_ref[...] = jnp.dot(enc_ref[...], we_ref[...],
                          preferred_element_type=jnp.float32) + be_ref[...]


# ---------------------------------------------------------------------------
# Kernel 2: attention (Alignment) + GRU cell + maxout/MaxPool1d(2) + output
# One batch tile per grid step.
# ---------------------------------------------------------------------------
def _decoder_step_kernel(
        eh_ref, enc_ref, emb_ref, h_ref,
        wd_ref, bd_ref, v_ref,
        wire_ref, wirc_ref, wize_ref, wizc_ref, wine_ref, winc_ref,
        whr_ref, whz_ref, whn_ref,
        br_ref, bz_ref, bni_ref, bnh_ref,
        wmae_ref, wmac_ref, wmah_ref, wmbe_ref, wmbc_ref, wmbh_ref,
        bma_ref, bmb_ref,
        wo_ref, bo_ref,
        logits_ref, hnew_ref):
    tb, S, A = eh_ref.shape

    eh = eh_ref[...]                                   # (tb, S, A) projected encoder states
    enc = enc_ref[...]                                 # (tb, S, E) raw encoder states
    emb = emb_ref[...]                                 # (tb, Emb)
    h0 = h_ref[...]                                    # (tb, H)

    def mm(a, b):
        return jnp.dot(a, b, preferred_element_type=jnp.float32)

    # ---- Alignment attention --------------------------------------------
    dh = mm(h0, wd_ref[...]) + bd_ref[...]             # (tb, A) one matmul per tile
    t = jnp.tanh(eh + dh[:, None, :])                  # (tb, S, A)
    s = jnp.sum(t * v_ref[...], axis=-1)               # (tb, S)  VPU mul + lane reduce

    # emulate the per-row python `break`: position j valid iff no projected row
    # at or before j is exactly all-zero (O(S), no SxS mask / matmul).
    bad = jnp.sum(jnp.abs(eh), axis=-1) == 0.0                      # (tb, S)
    pos = lax.broadcasted_iota(jnp.int32, (tb, S), 1).astype(jnp.float32)
    first_bad = jnp.min(jnp.where(bad, pos, jnp.float32(S)),
                        axis=1, keepdims=True)                      # (tb, 1)
    valid = pos < first_bad                                         # (tb, S)

    # masked softmax over the sequence axis.
    # TODO(synk): legacy nn.Softmax() on the (l, 1) score tensor would normalize
    # the size-1 dim (all-ones scores); we implement the clearly intended
    # sequence-axis softmax instead.
    sm = jnp.where(valid, s, -1e30)
    m = jnp.max(sm, axis=1, keepdims=True)
    p = jnp.exp(sm - m) * jnp.where(valid, 1.0, 0.0)
    denom = jnp.sum(p, axis=1, keepdims=True)
    denom = jnp.where(denom > 0.0, denom, 1.0)         # guard all-invalid -> no NaN
    scores = p * pl.reciprocal(denom, approx=True)     # EUP reciprocal (free slot)

    ctx = jnp.sum(scores[:, :, None] * enc, axis=1)    # (tb, E) context vector

    # ---- GRU cell, one step (torch gate order r, z, n) -------------------
    def sig(x):
        return 1.0 / (1.0 + jnp.exp(-x))

    r = sig(mm(emb, wire_ref[...]) + mm(ctx, wirc_ref[...])
            + mm(h0, whr_ref[...]) + br_ref[...])
    z = sig(mm(emb, wize_ref[...]) + mm(ctx, wizc_ref[...])
            + mm(h0, whz_ref[...]) + bz_ref[...])
    n = jnp.tanh(mm(emb, wine_ref[...]) + mm(ctx, winc_ref[...]) + bni_ref[...]
                 + r * (mm(h0, whn_ref[...]) + bnh_ref[...]))
    h_new = (1.0 - z) * n + z * h0                     # (tb, H)

    # ---- maxout linear + MaxPool1d(2) + output linear ---------------------
    mo_a = (mm(emb, wmae_ref[...]) + mm(ctx, wmac_ref[...])
            + mm(h_new, wmah_ref[...]) + bma_ref[...])     # even maxout units
    mo_b = (mm(emb, wmbe_ref[...]) + mm(ctx, wmbc_ref[...])
            + mm(h_new, wmbh_ref[...]) + bmb_ref[...])     # odd maxout units
    pooled = jnp.maximum(mo_a, mo_b)                       # (tb, M)

    logits_ref[...] = mm(pooled, wo_ref[...]) + bo_ref[...]
    hnew_ref[...] = h_new


# ---------------------------------------------------------------------------
# Wrapper
# ---------------------------------------------------------------------------
def decoder_forward(inputs, hidden, encoder_hiddens, params, *, tb=None):
    """One Decoder.forward step.  Returns (logits (B, O), hidden (B, 1, H))."""
    B, S, E = encoder_hiddens.shape
    H = hidden.shape[-1]
    emb_table = params["embedding"]
    Emb = emb_table.shape[1]
    A = params["we_t"].shape[1]
    M, O = params["w_out_t"].shape

    # TODO(synk): nn.Embedding is a data-dependent row gather; done with a plain
    # JAX take in the wrapper (no rectangular BlockSpec equivalent).
    emb = jnp.take(emb_table, inputs, axis=0).astype(jnp.float32)   # (B, Emb)
    h0 = hidden.reshape(B, H)                # == decoder_hidden.view(B, -1)

    # Batch tile: whole (small) batch per grid step; cap at 64 rows so the
    # double-buffered (tb, S, E)/(tb, S, A) blocks stay far below the default
    # scoped VMEM on every generation (incl. v7x's 32 MiB).
    if tb is None:
        tb = B if B <= 64 else 64
    n_tiles = pl.cdiv(B, tb)
    Bp = n_tiles * tb
    enc = encoder_hiddens.astype(jnp.float32)
    if Bp != B:
        pad = Bp - B
        enc = jnp.pad(enc, ((0, pad), (0, 0), (0, 0)))
        emb = jnp.pad(emb, ((0, pad), (0, 0)))
        h0 = jnp.pad(h0, ((0, pad), (0, 0)))

    # ---- pre-split weights outside the kernel -----------------------------
    be = params["be"].reshape(1, A)
    bd = params["bd"].reshape(1, A)
    v = params["v"]                                           # (1, A)

    w_ih_t, w_hh_t = params["w_ih_t"], params["w_hh_t"]       # (Emb+E, 3H), (H, 3H)
    b_ih, b_hh = params["b_ih"], params["b_hh"]

    def gate(wt, g):
        return wt[:, g * H:(g + 1) * H]

    wir, wiz, win = gate(w_ih_t, 0), gate(w_ih_t, 1), gate(w_ih_t, 2)
    whr, whz, whn = gate(w_hh_t, 0), gate(w_hh_t, 1), gate(w_hh_t, 2)
    wire, wirc = wir[:Emb], wir[Emb:]
    wize, wizc = wiz[:Emb], wiz[Emb:]
    wine, winc = win[:Emb], win[Emb:]
    br = (b_ih[0:H] + b_hh[0:H]).reshape(1, H)
    bz = (b_ih[H:2 * H] + b_hh[H:2 * H]).reshape(1, H)
    bni = b_ih[2 * H:3 * H].reshape(1, H)
    bnh = b_hh[2 * H:3 * H].reshape(1, H)

    w_max_t, b_max = params["w_max_t"], params["b_max"]       # (Emb+E+H, 2M), (2M,)
    wma, wmb = w_max_t[:, 0::2], w_max_t[:, 1::2]             # MaxPool1d(2) pairs
    wmae, wmac, wmah = wma[:Emb], wma[Emb:Emb + E], wma[Emb + E:]
    wmbe, wmbc, wmbh = wmb[:Emb], wmb[Emb:Emb + E], wmb[Emb + E:]
    bma = b_max[0::2].reshape(1, M)
    bmb = b_max[1::2].reshape(1, M)
    wo_t = params["w_out_t"]                                  # (M, O)
    bo = params["b_out"].reshape(1, O)

    # ---- kernel 1: one dense (Bp*S, E) @ (E, A) projection ----------------
    enc_flat = enc.reshape(Bp * S, E)
    eh_flat = pl.pallas_call(
        _encoder_proj_kernel,
        out_shape=jax.ShapeDtypeStruct((Bp * S, A), jnp.float32),
        grid_spec=pltpu.PrefetchScalarGridSpec(
            num_scalar_prefetch=0,
            grid=(n_tiles,),
            in_specs=[
                pl.BlockSpec((tb * S, E), lambda b: (b, 0)),
                pl.BlockSpec((E, A), lambda b: (0, 0)),
                pl.BlockSpec((1, A), lambda b: (0, 0)),
            ],
            out_specs=pl.BlockSpec((tb * S, A), lambda b: (b, 0)),
        ),
        compiler_params=pltpu.CompilerParams(
            dimension_semantics=("parallel",)),
    )(enc_flat, params["we_t"], be)
    eh3 = eh_flat.reshape(Bp, S, A)

    # ---- kernel 2: attention + GRU + maxout + output, one tile per step ----
    def rep(shape):
        return pl.BlockSpec(shape, lambda b: (0,) * len(shape))

    grid_spec = pltpu.PrefetchScalarGridSpec(
        num_scalar_prefetch=0,
        grid=(n_tiles,),
        in_specs=[
            pl.BlockSpec((tb, S, A), lambda b: (b, 0, 0)),   # projected encoder
            pl.BlockSpec((tb, S, E), lambda b: (b, 0, 0)),   # raw encoder
            pl.BlockSpec((tb, Emb), lambda b: (b, 0)),       # embedded token
            pl.BlockSpec((tb, H), lambda b: (b, 0)),         # previous hidden
            rep((H, A)), rep((1, A)), rep((1, A)),           # wd_t, bd, v
            rep((Emb, H)), rep((E, H)),                      # W_ir slabs
            rep((Emb, H)), rep((E, H)),                      # W_iz slabs
            rep((Emb, H)), rep((E, H)),                      # W_in slabs
            rep((H, H)), rep((H, H)), rep((H, H)),           # W_hr, W_hz, W_hn
            rep((1, H)), rep((1, H)), rep((1, H)), rep((1, H)),  # br, bz, bni, bnh
            rep((Emb, M)), rep((E, M)), rep((H, M)),         # maxout even slabs
            rep((Emb, M)), rep((E, M)), rep((H, M)),         # maxout odd slabs
            rep((1, M)), rep((1, M)),                        # bma, bmb
            rep((M, O)), rep((1, O)),                        # output linear
        ],
        out_specs=[
            pl.BlockSpec((tb, O), lambda b: (b, 0)),
            pl.BlockSpec((tb, H), lambda b: (b, 0)),
        ],
    )

    logits, h_new = pl.pallas_call(
        _decoder_step_kernel,
        out_shape=(jax.ShapeDtypeStruct((Bp, O), jnp.float32),
                   jax.ShapeDtypeStruct((Bp, H), jnp.float32)),
        grid_spec=grid_spec,
        compiler_params=pltpu.CompilerParams(
            dimension_semantics=("parallel",)),   # (pltpu.CORE_PARALLEL is a v7x option)
    )(eh3, enc, emb, h0,
      params["wd_t"], bd, v,
      wire, wirc, wize, wizc, wine, winc,
      whr, whz, whn,
      br, bz, bni, bnh,
      wmae, wmac, wmah, wmbe, wmbc, wmbh,
      bma, bmb,
      wo_t, bo)

    return logits[:B], h_new[:B].reshape(B, 1, H)


# ---------------------------------------------------------------------------
# Pure-JAX reference of the intended Decoder forward (one step)
# ---------------------------------------------------------------------------
def reference_decoder(inputs, hidden, encoder_hiddens, params):
    B, S, E = encoder_hiddens.shape
    H = hidden.shape[-1]
    emb = params["embedding"][inputs]                        # (B, Emb)
    h0 = hidden.reshape(B, H)

    # Alignment attention
    eh = encoder_hiddens @ params["we_t"] + params["be"]     # (B, S, A)
    dh = h0 @ params["wd_t"] + params["bd"]                  # (B, A)
    t = jnp.tanh(eh + dh[:, None, :])
    s = jnp.einsum("bsa,a->bs", t, params["v"][0])
    bad = jnp.sum(jnp.abs(eh), axis=-1) == 0.0
    pos = jnp.arange(S, dtype=jnp.float32)[None, :]
    first_bad = jnp.min(jnp.where(bad, pos, jnp.float32(S)), axis=1, keepdims=True)
    valid = pos < first_bad
    sm = jnp.where(valid, s, -1e30)
    p = jnp.exp(sm - jnp.max(sm, axis=1, keepdims=True)) * jnp.where(valid, 1.0, 0.0)
    denom = jnp.sum(p, axis=1, keepdims=True)
    denom = jnp.where(denom > 0.0, denom, 1.0)
    scores = p / denom
    ctx = jnp.einsum("bs,bse->be", scores, encoder_hiddens)

    # GRU cell (torch gate order r, z, n)
    x = jnp.concatenate([emb, ctx], axis=1)
    gi = x @ params["w_ih_t"] + params["b_ih"]
    gh = h0 @ params["w_hh_t"] + params["b_hh"]
    r = jax.nn.sigmoid(gi[:, :H] + gh[:, :H])
    z = jax.nn.sigmoid(gi[:, H:2 * H] + gh[:, H:2 * H])
    n = jnp.tanh(gi[:, 2 * H:] + r * gh[:, 2 * H:])
    h_new = (1.0 - z) * n + z * h0

    # maxout + MaxPool1d(2) + output
    x2 = jnp.concatenate([emb, ctx, h_new], axis=1)
    mo = x2 @ params["w_max_t"] + params["b_max"]
    M = mo.shape[1] // 2
    pooled = jnp.max(mo.reshape(B, M, 2), axis=-1)
    logits = pooled @ params["w_out_t"] + params["b_out"]
    return logits, h_new.reshape(B, 1, H)


# ---------------------------------------------------------------------------
# Parameter init (deterministic; torch-like uniform bounds, transposed layout)
# ---------------------------------------------------------------------------
def init_params(key, *, output_size, embed_size, hidden_size, attention_size,
                maxout_size):
    H, A, M, O, Emb = hidden_size, attention_size, maxout_size, output_size, embed_size
    E = 2 * H
    In = Emb + E
    Cin = Emb + E + H
    ks = jax.random.split(key, 14)

    def u(k, shape, fan_in):
        b = 1.0 / math.sqrt(fan_in)
        return jax.random.uniform(k, shape, jnp.float32, -b, b)

    return {
        "embedding": jax.random.normal(ks[0], (O, Emb), jnp.float32),
        # Alignment
        "we_t": u(ks[1], (E, A), E),
        "be":   u(ks[2], (A,), E),
        "wd_t": u(ks[3], (H, A), H),
        "bd":   u(ks[4], (A,), H),
        # nn.Parameter(torch.FloatTensor(1, A)) is uninitialized in torch; use a
        # small deterministic normal init.
        "v":    0.1 * jax.random.normal(ks[5], (1, A), jnp.float32),
        # GRU (weights transposed; gate order r, z, n)
        "w_ih_t": u(ks[6], (In, 3 * H), H),
        "w_hh_t": u(ks[7], (H, 3 * H), H),
        "b_ih":   u(ks[8], (3 * H,), H),
        "b_hh":   u(ks[9], (3 * H,), H),
        # maxout / output linears (transposed)
        "w_max_t": u(ks[10], (Cin, 2 * M), Cin),
        "b_max":   u(ks[11], (2 * M,), Cin),
        "w_out_t": u(ks[12], (M, O), M),
        "b_out":   u(ks[13], (O,), M),
    }


if __name__ == "__main__":
    B, S = 2, 8
    hidden_size = 32          # GRU / encoder (per-direction) hidden size
    attention_size = 64
    embed_size = 16
    maxout_size = 16
    output_size = 100

    key = jax.random.PRNGKey(0)
    kp, ki, kh, ke = jax.random.split(key, 4)
    params = init_params(kp, output_size=output_size, embed_size=embed_size,
                         hidden_size=hidden_size, attention_size=attention_size,
                         maxout_size=maxout_size)

    inputs = jax.random.randint(ki, (B,), 0, output_size, dtype=jnp.int32)
    hidden = jax.random.normal(kh, (B, 1, hidden_size), jnp.float32)
    encoder_hiddens = jax.random.normal(ke, (B, S, 2 * hidden_size), jnp.float32)

    logits, h_new = decoder_forward(inputs, hidden, encoder_hiddens, params)
    logits = jax.block_until_ready(logits)
    h_new = jax.block_until_ready(h_new)

    ref_logits, ref_h = reference_decoder(inputs, hidden, encoder_hiddens, params)
    assert logits.shape == (B, output_size)
    assert h_new.shape == (B, 1, hidden_size)
    # tolerance covers the MXU f32 path + the approximate EUP reciprocal in softmax
    assert jnp.allclose(logits, ref_logits, atol=2e-2, rtol=2e-2), (
        f"logits max abs diff {float(jnp.max(jnp.abs(logits - ref_logits)))}")
    assert jnp.allclose(h_new, ref_h, atol=2e-2, rtol=2e-2), (
        f"hidden max abs diff {float(jnp.max(jnp.abs(h_new - ref_h)))}")

    print("KERNEL_OK")
</pallas_src>

<mosaic_0001>
module attributes {stable_mosaic.version = 11 : i64} {
  func.func @_encoder_proj_kernel(%arg0: i32, %arg1: memref<16x64xf32, #tpu.memory_space<vmem>>, %arg2: memref<64x64xf32, #tpu.memory_space<vmem>>, %arg3: memref<1x64xf32, #tpu.memory_space<vmem>>, %arg4: memref<16x64xf32, #tpu.memory_space<vmem>>) attributes {dimension_semantics = [#tpu.dimension_semantics<parallel>], iteration_bounds = array<i64: 1>, scalar_prefetch = 0 : i64, scratch_operands = 0 : i64, tpu.core_type = #tpu.core_type<tc>, window_params = [{transform_indices = @transform_0, window_bounds = array<i64: 16, 64>}, {pipeline_mode = #tpu.pipeline_mode<synchronous>, transform_indices = @transform_1, window_bounds = array<i64: 64, 64>}, {pipeline_mode = #tpu.pipeline_mode<synchronous>, transform_indices = @transform_2, window_bounds = array<i64: 1, 64>}, {transform_indices = @transform_3, window_bounds = array<i64: 16, 64>}]} {
    %c0 = arith.constant 0 : index
    %c0_0 = arith.constant 0 : index
    %0 = vector.load %arg1[%c0, %c0_0] : memref<16x64xf32, #tpu.memory_space<vmem>>, vector<16x64xf32>
    %c0_1 = arith.constant 0 : index
    %c0_2 = arith.constant 0 : index
    %1 = vector.load %arg2[%c0_1, %c0_2] : memref<64x64xf32, #tpu.memory_space<vmem>>, vector<64x64xf32>
    %cst = arith.constant dense<0.000000e+00> : vector<16x64xf32>
    %2 = tpu.matmul %0, %1, %cst {dimension_numbers = #tpu.dot_dimension_numbers<[1], [0], [0], [1], [0, 0, 1, 1], [], []>, precision = #tpu.contract_precision<fp32>} : vector<16x64xf32>, vector<64x64xf32>, vector<16x64xf32> -> vector<16x64xf32>
    %c0_3 = arith.constant 0 : index
    %c0_4 = arith.constant 0 : index
    %3 = vector.load %arg3[%c0_3, %c0_4] : memref<1x64xf32, #tpu.memory_space<vmem>>, vector<1x64xf32>
    %4 = vector.broadcast %3 : vector<1x64xf32> to vector<16x64xf32>
    %5 = arith.addf %2, %4 : vector<16x64xf32>
    %c0_5 = arith.constant 0 : index
    %c0_6 = arith.constant 0 : index
    %6 = vector.load %arg4[%c0_5, %c0_6] : memref<16x64xf32, #tpu.memory_space<vmem>>, vector<16x64xf32>
    tpu.vector_store %arg4[%c0_5, %c0_6], %5 {strides = array<i32>} : memref<16x64xf32, #tpu.memory_space<vmem>>, vector<16x64xf32>,
    return
  }
  func.func @transform_0(%arg0: i32) -> (i32, i32) {
    %c0_i32 = arith.constant 0 : i32
    %c0_i32_0 = arith.constant 0 : i32
    return %arg0, %c0_i32 : i32, i32
  }
  func.func @transform_1(%arg0: i32) -> (i32, i32) {
    %c0_i32 = arith.constant 0 : i32
    %c0_i32_0 = arith.constant 0 : i32
    %c0_i32_1 = arith.constant 0 : i32
    return %c0_i32, %c0_i32_0 : i32, i32
  }
  func.func @transform_2(%arg0: i32) -> (i32, i32) {
    %c0_i32 = arith.constant 0 : i32
    %c0_i32_0 = arith.constant 0 : i32
    %c0_i32_1 = arith.constant 0 : i32
    return %c0_i32, %c0_i32_0 : i32, i32
  }
  func.func @transform_3(%arg0: i32) -> (i32, i32) {
    %c0_i32 = arith.constant 0 : i32
    %c0_i32_0 = arith.constant 0 : i32
    return %arg0, %c0_i32 : i32, i32
  }
}

</mosaic_0001>

<bundles_post_ra>
// kernel: tpu_custom_call.1
= control target key start
LH: loop header
LB: loop body
LE: loop exit
PB: predicated region body
PF: predicated region fallthrough
CT: control target
= control target key end

     0   :  { %8 = vsyncpa [#allocation3], 0  ;;  %s1198_s0 = inlined_call_operand.hbm [shape: f32[16,64], index: 0, kind: input, shape index: {}]   ;;  %s1199_s1 = inlined_call_operand.hbm [shape: f32[64,64], index: 1, kind: input, shape index: {}]   ;;  %s1200_s2 = inlined_call_operand.vmem [shape: f32[1,64], index: 2, kind: input, shape index: {}]   ;;  %s1201_s3 = inlined_call_operand.hbm [shape: f32[16,64], index: 3, kind: output, shape index: {}]  }
   0x1   :  { %9 = vsyncpa [#allocation6], 0 }
   0x2   :  { %10 = vsyncpa [#allocation4], 0  ;;  %s1027_s12 = smov [#allocation2]   ;;  %s955_s16 = scalar_lea.hbm %s1198_s0, 256 }
   0x3   :  { %s16_s13 = sshll.u32 %s1027_s12, 4  ;;  %p956_p0 = scmp.ne.s32.totalorder %s1198_s0, %s955_s16  ;;  %s17_s13 = int_to_ptr.vmem [resolvable:$true] %s16_s13 }
   0x4   :  { %p959_p1 = scmp.lt.u32.totalorder %s955_s16, %s1198_s0 }
   0x6   :  { %p961_p2 = pnand %p959_p1, %p956_p0 }
   0x8   :  { %964 = shalt.err (!%p961_p2)
}
   0x9   :  { %s965_s21 = scalar_lea.vmem %s17_s13, 256  ;;  %p970_p4 = scmp.lt.s32.totalorder %s17_s13, %s17_s13 }
   0xa   :  { %p966_p3 = scmp.ne.s32.totalorder %s17_s13, %s965_s21  ;;  %p971_p5 = scmp.lt.s32.totalorder %s965_s21, %s965_s21 }
   0xc   :  { %p972_p6 = por %p971_p5, %p970_p4 }
   0xe   :  { %p973_p7 = pnand %p972_p6, %p966_p3 }
  0x10   :  { %976 = shalt.err (!%p973_p7)
}
  0x11   :  { %s1028_s22 = smov 128   ;;  %s1029_s23 = smov 8  }
  0x12   :  { %22 = dma.hbm_to_vmem [thread:$0]  %s1198_s0, 256, %s17_s13, [#allocation3], %s1028_s22, %s1028_s22, %s1029_s23  }
  0x13   :  { %s1030_s26 = smov [#allocation5]   ;;  %s977_s30 = scalar_lea.hbm %s1199_s1, 1024 }
  0x14   :  { %s28_s27 = sshll.u32 %s1030_s26, 4  ;;  %p978_p8 = scmp.ne.s32.totalorder %s1199_s1, %s977_s30  ;;  %s29_s27 = int_to_ptr.vmem [resolvable:$true] %s28_s27 }
  0x15   :  { %p981_p9 = scmp.lt.u32.totalorder %s977_s30, %s1199_s1 }
  0x17   :  { %p983_p10 = pnand %p981_p9, %p978_p8 }
  0x19   :  { %986 = shalt.err (!%p983_p10)
}
  0x1a   :  { %s987_s8 = scalar_lea.vmem %s29_s27, 1024  ;;  %p992_p12 = scmp.lt.s32.totalorder %s29_s27, %s29_s27 }
  0x1b   :  { %p988_p11 = scmp.ne.s32.totalorder %s29_s27, %s987_s8  ;;  %p993_p13 = scmp.lt.s32.totalorder %s987_s8, %s987_s8 }
  0x1d   :  { %p994_p0 = por %p993_p13, %p992_p12 }
  0x1f   :  { %p995_p1 = pnand %p994_p0, %p988_p11 }
  0x21   :  { %998 = shalt.err (!%p995_p1)
}
  0x22   :  { %34 = dma.hbm_to_vmem [thread:$0]  %s1199_s1, 1024, %s29_s27, [#allocation6], %s1028_s22, %s1028_s22, %s1029_s23  }
  0x23   :  { %1021 = dma.done.wait [#allocation3], 256  }
  0x24   :  { %1022 = vsyncadd [#allocation3], 4294967040 }
  0x25   :  { %1023 = dma.done.wait [#allocation6], 1024  }
  0x26   :  { %1024 = vsyncadd [#allocation6], 4294966272  ;;  %v45_v0 = vld [vmem:[#allocation5] sm:$0xff]  ;;  %v46_v1 = vld [vmem:[#allocation5 + $0x8] sm:$0xff]  ;;  %vm60_vm0 = vcmask 523264   ;;  %s1031_s11 = smov [#allocation7]  }
  0x27   :  { %v47_v2 = vld [vmem:[#allocation5 + $0x10] sm:$0xff]  ;;  %v68_v3 = vand.u32 4294901760, %v45_v0  ;;  %v71_v4 = vand.u32 4294901760, %v46_v1  ;;  %v48_v5 = vld [vmem:[#allocation5 + $0x18] sm:$0xff]  ;;  %v49_v7 = vld [vmem:[#allocation5 + $0x20] sm:$0xff]  ;;  %s654_s12 = sshll.u32 %s1031_s11, 4  ;;  %s655_s12 = int_to_ptr.vmem [resolvable:$true] %s654_s12 }
  0x28   :  { %v74_v6 = vand.u32 4294901760, %v47_v2  ;;  %v50_v8 = vld [vmem:[#allocation5 + $0x28] sm:$0xff]  ;;  %v77_v9 = vand.u32 4294901760, %v48_v5  ;;  %v80_v10 = vand.u32 4294901760, %v49_v7  ;;  %v51_v12 = vld [vmem:[#allocation5 + $0x30] sm:$0xff]  ;;  %v52_v13 = vld [vmem:[#allocation5 + $0x38] sm:$0xff]  ;;  %p1004_p3 = scmp.lt.s32.totalorder %s655_s12, %s655_s12 }
  0x29   :  { %v83_v11 = vand.u32 4294901760, %v50_v8  ;;  %v43_v14 = vld [vmem:[#allocation2] sm:$0xff]  ;;  %v1082_v15 = vpack.c.bf16 %v71_v4, %v68_v3  ;;  %v86_v16 = vand.u32 4294901760, %v51_v12  ;;  %v44_v18 = vld [vmem:[#allocation2 + $0x8] sm:$0xff]  ;;  %v89_v20 = vand.u32 4294901760, %v52_v13  ;;  %s999_s13 = scalar_lea.vmem %s655_s12, 256 }
  0x2a   :  { %v62_v17 = vsel %vm60_vm0, %v43_v14, 0  ;;  %v1085_v19 = vpack.c.bf16 %v77_v9, %v74_v6  ;;  %v1089_v22 = vsub.f32 %v45_v0, %v68_v3  ;;  %v1095_v24 = vsub.f32 %v46_v1, %v71_v4  ;;  %v667_v14 = vld [vmem:[%s1200_s2] ss:$0 sm:$0xff]  ;;  %p1000_p2 = scmp.ne.s32.totalorder %s655_s12, %s999_s13  ;;  %p1005_p4 = scmp.lt.s32.totalorder %s999_s13, %s999_s13 }
  0x2b   :  { %v1087_v21 = vand.u32 4294901760, %v62_v17  ;;  %843 = vmatprep.subr.bf16.mxu1 %v1082_v15  ;;  %891 = vmatprep.subr.bf16.mxu0 %v1082_v15  ;;  %v1093_v23 = vpack.c.bf16 %v83_v11, %v80_v10  ;;  %v65_v25 = vsel %vm60_vm0, %v44_v18, 0  ;;  %v1098_v26 = vsub.f32 %v47_v2, %v74_v6 }
  0x2c   :  { %845 = vmatpush3.bf16.msra.mxu1 %v1082_v15  ;;  %893 = vmatpush3.bf16.msra.mxu0 %v1082_v15  ;;  %v163_v28 = vand.u32 4294901760, %v1089_v22  ;;  %v1106_v29 = vand.u32 4294901760, %v65_v25  ;;  %v1108_v30 = vsub.f32 %v48_v5, %v77_v9  ;;  %v170_v31 = vand.u32 4294901760, %v1095_v24  ;;  %p1006_p5 = por %p1005_p4, %p1004_p3 }
  0x2d   :  { %v1103_v27 = vsub.f32 %v62_v17, %v1087_v21  ;;  %847 = vmatprep.subr.bf16.mxu1 %v1085_v19  ;;  %895 = vmatprep.subr.bf16.mxu0 %v1085_v19  ;;  %v177_v32 = vand.u32 4294901760, %v1098_v26  ;;  %v1114_v33 = vsub.f32 %v49_v7, %v80_v10  ;;  %v1116_v34 = vsub.f32 %v50_v8, %v83_v11 }
  0x2e   :  { %v164_v36 = vsub.f32 %v1089_v22, %v163_v28  ;;  %v1121_v37 = vsub.f32 %v65_v25, %v1106_v29  ;;  %v184_v38 = vand.u32 4294901760, %v1108_v30  ;;  %v171_v39 = vsub.f32 %v1095_v24, %v170_v31  ;;  %p1007_p6 = pnand %p1006_p5, %p1000_p2 }
  0x2f   :  { %v142_v35 = vand.u32 4294901760, %v1103_v27  ;;  %v178_v40 = vsub.f32 %v1098_v26, %v177_v32  ;;  %v191_v44 = vand.u32 4294901760, %v1114_v33  ;;  %v1134_v45 = vpack.c.bf16 %v89_v20, %v86_v16 }
  0x30   :  { %849 = vmatpush3.bf16.msra.mxu1 %v1085_v19  ;;  %897 = vmatpush3.bf16.msra.mxu0 %v1085_v19  ;;  %v152_v42 = vand.u32 4294901760, %v1121_v37  ;;  %v185_v43 = vsub.f32 %v1108_v30, %v184_v38  ;;  %v165_v46 = vand.u32 4294901760, %v164_v36  ;;  %v172_v47 = vand.u32 4294901760, %v171_v39 }
  0x31   :  { %v143_v41 = vsub.f32 %v1103_v27, %v142_v35  ;;  %851 = vmatprep.subr.bf16.mxu1 %v1093_v23  ;;  %899 = vmatprep.subr.bf16.mxu0 %v1093_v23  ;;  %v198_v49 = vand.u32 4294901760, %v1116_v34  ;;  %v1138_v51 = vsub.f32 %v51_v12, %v86_v16  ;;  %v1140_v52 = vsub.f32 %v52_v13, %v89_v20 }
  0x32   :  { %801 = vmatprep.mubr.f32.mxu0 %v142_v35  ;;  %v153_v50 = vsub.f32 %v1121_v37, %v152_v42  ;;  %v906_v53 = vpack.c.bf16 %v170_v31, %v163_v28  ;;  %v179_v54 = vand.u32 4294901760, %v178_v40  ;;  %v186_v55 = vand.u32 4294901760, %v185_v43 }
  0x33   :  { %v144_v48 = vand.u32 4294901760, %v143_v41  ;;  %v192_v56 = vsub.f32 %v1114_v33, %v191_v44  ;;  %v858_v57 = vpack.c.bf16 %v172_v47, %v165_v46  ;;  %v199_v58 = vsub.f32 %v1116_v34, %v198_v49 }
  0x34   :  { %853 = vmatpush3.bf16.msra.mxu1 %v1093_v23  ;;  %901 = vmatpush3.bf16.msra.mxu0 %v1093_v23  ;;  %v205_v59 = vand.u32 4294901760, %v1138_v51  ;;  %v212_v60 = vand.u32 4294901760, %v1140_v52  ;;  %v154_v61 = vand.u32 4294901760, %v153_v50  ;;  %v910_v62 = vpack.c.bf16 %v184_v38, %v177_v32 }
  0x35   :  { %855 = vmatprep.subr.bf16.mxu1 %v1134_v45  ;;  %903 = vmatprep.subr.bf16.mxu0 %v1134_v45  ;;  %v193_v63 = vand.u32 4294901760, %v192_v56  ;;  %v862_v0 = vpack.c.bf16 %v186_v55, %v179_v54  ;;  %v200_v1 = vand.u32 4294901760, %v199_v58  ;;  %v914_v5 = vpack.c.bf16 %v198_v49, %v191_v44 }
  0x36   :  { %744 = vmatprep.mubr.f32.mxu1 %v144_v48  ;;  %v206_v2 = vsub.f32 %v1138_v51, %v205_v59  ;;  %v213_v3 = vsub.f32 %v1140_v52, %v212_v60  ;;  %v918_v9 = vpack.c.bf16 %v212_v60, %v205_v59  ;;  %v874_v10 = vpack.c.bf16 %v1095_v24, %v1089_v22 }
  0x37   :  { %v866_v4 = vpack.c.bf16 %v200_v1, %v193_v63  ;;  %v878_v11 = vpack.c.bf16 %v1108_v30, %v1098_v26  ;;  %v882_v12 = vpack.c.bf16 %v1116_v34, %v1114_v33  ;;  %v886_v13 = vpack.c.bf16 %v1140_v52, %v1138_v51 }
  0x38   :  { %857 = vmatpush3.bf16.msra.mxu1 %v1134_v45  ;;  %905 = vmatpush3.bf16.msra.mxu0 %v1134_v45  ;;  %v207_v6 = vand.u32 4294901760, %v206_v2  ;;  %v214_v7 = vand.u32 4294901760, %v213_v3 }
  0x39   :  { %859 = vmatprep.subr.bf16.mxu1 %v858_v57  ;;  %907 = vmatprep.subr.bf16.mxu0 %v906_v53 }
  0x3a   :  { %v870_v8 = vpack.c.bf16 %v214_v7, %v207_v6 }
  0x3b   :  { %745 = vmatmul.mubr.f32.vlgmr.msra.gmra.mrb[0].mxu1 %v154_v61  ;;  %802 = vmatmul.mubr.f32.vlgmr.msra.gmra.mrb[0].mxu0 %v152_v42 }
  0x3c   :  { %861 = vmatpush3.bf16.msra.mxu1 %v858_v57  ;;  %909 = vmatpush3.bf16.msra.mxu0 %v906_v53 }
  0x3d   :  { %863 = vmatprep.subr.bf16.mxu1 %v862_v0  ;;  %911 = vmatprep.subr.bf16.mxu0 %v910_v62 }
  0x3e   :  { %763 = vmatprep.mubr.f32.mxu1 %v1087_v21  ;;  %820 = vmatprep.mubr.f32.mxu0 %v1087_v21 }
  0x40   :  { %865 = vmatpush3.bf16.msra.mxu1 %v862_v0  ;;  %913 = vmatpush3.bf16.msra.mxu0 %v910_v62 }
  0x41   :  { %867 = vmatprep.subr.bf16.mxu1 %v866_v4  ;;  %915 = vmatprep.subr.bf16.mxu0 %v914_v5 }
  0x44   :  { %869 = vmatpush3.bf16.msra.mxu1 %v866_v4  ;;  %917 = vmatpush3.bf16.msra.mxu0 %v914_v5 }
  0x45   :  { %871 = vmatprep.subr.bf16.mxu1 %v870_v8  ;;  %919 = vmatprep.subr.bf16.mxu0 %v918_v9 }
  0x48   :  { %873 = vmatpush3.bf16.msra.mxu1 %v870_v8  ;;  %921 = vmatpush3.bf16.msra.mxu0 %v918_v9 }
  0x49   :  { %875 = vmatprep.subr.bf16.mxu1 %v874_v10  ;;  %923 = vmatprep.subr.bf16.mxu0 %v1082_v15 }
  0x4b   :  { %764 = vmatmul.mubr.f32.vlgmr.msra.gmra.mrb[0].mxu1 %v1106_v29  ;;  %821 = vmatmul.mubr.f32.vlgmr.msra.gmra.mrb[0].mxu0 %v1106_v29 }
  0x4c   :  { %877 = vmatpush3.bf16.msra.mxu1 %v874_v10  ;;  %925 = vmatpush3.bf16.msra.mxu0 %v1082_v15 }
  0x4d   :  { %879 = vmatprep.subr.bf16.mxu1 %v878_v11  ;;  %927 = vmatprep.subr.bf16.mxu0 %v1085_v19 }
  0x4e   :  { %782 = vmatprep.mubr.f32.mxu1 %v1103_v27  ;;  %839 = vmatprep.mubr.f32.mxu0 %v1087_v21 }
  0x50   :  { %881 = vmatpush3.bf16.msra.mxu1 %v878_v11  ;;  %929 = vmatpush3.bf16.msra.mxu0 %v1085_v19 }
  0x51   :  { %883 = vmatprep.subr.bf16.mxu1 %v882_v12  ;;  %931 = vmatprep.subr.bf16.mxu0 %v1093_v23 }
  0x54   :  { %885 = vmatpush3.bf16.msra.mxu1 %v882_v12  ;;  %933 = vmatpush3.bf16.msra.mxu0 %v1093_v23 }
  0x55   :  { %887 = vmatprep.subr.bf16.mxu1 %v886_v13  ;;  %935 = vmatprep.subr.bf16.mxu0 %v1134_v45 }
  0x58   :  { %889 = vmatpush3.bf16.msra.mxu1 %v886_v13  ;;  %937 = vmatpush3.bf16.msra.mxu0 %v1134_v45 }
  0x5b   :  { %783 = vmatmul.mubr.f32.vlgmr.msra.gmra.mrb[0].mxu1 %v1121_v37  ;;  %840 = vmatmul.mubr.f32.vlgmr.msra.gmra.mrb[0].mxu0 %v1106_v29 }
 0x12e   :  { %v784_v15 = vpop.f32.mrb[0].mxu1  ;;  %v841_v16 = vpop.f32.mrb[0].mxu0 }
 0x12f   :  { %v938_v17 = vadd.f32 %v784_v15, %v667_v14  ;;  %v361_v18 = vpop.f32.mrb[1].mxu1  ;;  %v637_v19 = vpop.f32.mrb[1].mxu0 }
 0x130   :  { %v940_v20 = vadd.f32 %v667_v14, %v361_v18 }
 0x131   :  { %v939_v21 = vadd.f32 %v938_v17, %v841_v16 }
 0x132   :  { %v941_v22 = vadd.f32 %v940_v20, %v637_v19 }
 0x133   :  { %648 = vst.msk [vmem:[#allocation7 + $0x8] sm:$0xff] %vm60_vm0, %v939_v21 }
 0x134   :  { %647 = vst.msk [vmem:[#allocation7] sm:$0xff] %vm60_vm0, %v941_v22 }
 0x135   :  { %1010 = shalt.err (!%p1007_p6)
}
 0x136   :  { %s1011_s15 = scalar_lea.hbm %s1201_s3, 256 }
 0x137   :  { %p1012_p7 = scmp.ne.s32.totalorder %s1201_s3, %s1011_s15  ;;  %p1015_p8 = scmp.lt.u32.totalorder %s1011_s15, %s1201_s3 }
 0x139   :  { %p1017_p9 = pnand %p1015_p8, %p1012_p7 }
 0x13b   :  { %1020 = shalt.err (!%p1017_p9)
}
 0x13c   :  { %660 = dma.vmem_to_hbm [thread:$0]  %s655_s12, 256, %s1201_s3, [#allocation4], %s1028_s22, %s1028_s22, %s1029_s23  }
 0x13d   :  { %1025 = dma.done.wait [#allocation4], 256  }
 0x13e   :  { %1026 = vsyncadd [#allocation4], 4294967040 }
 0x13f   :  { %664 = vsyncpa [#allocation3], 1 }
 0x140   :  { %665 = vsyncpa [#allocation6], 1 }
 0x141   :  { %666 = vsyncpa [#allocation4], 1 }

</bundles_post_ra>
